<compile_context>
chip_gen: v5e
topology: v5e:2x2
jax: 0.10.0
libtpu: 0.0.40
codegen_flags: <defaults>
</compile_context>

<pallas_src>
import functools

import jax
import jax.numpy as jnp
from jax.experimental import pallas as pl
from jax.experimental.pallas import tpu as pltpu


def _round_up(x, m):
    return ((x + m - 1) // m) * m


def _kiwi_kernel(n_layers, *refs):
    """Fused MLP kernel in feature-major (transposed) layout.

    refs layout:
      refs[0]               : xT_ref  [in_pad, tile_b]   (bf16)
      then per layer i      : w_ref   [out_i, in_i] bf16, b_ref [out_i, 1] f32
      refs[-1]              : out_ref [kids_pad, tile_b] (bf16)

    BatchNorm (eval) is pre-folded into the following layer's weight/bias and
    Dropout is identity at eval, so the body is a plain Linear(+ReLU) chain.
    """
    x_ref = refs[0]
    out_ref = refs[-1]
    params = refs[1:-1]

    h = x_ref[...]                                     # bf16 [in_pad, tile_b]
    for i in range(n_layers):
        w = params[2 * i][...]                         # bf16 [out_i, in_i]
        b = params[2 * i + 1][...]                     # f32  [out_i, 1]
        z = jnp.dot(w, h, preferred_element_type=jnp.float32) + b
        if i + 1 < n_layers:
            # ReLU on the VPU in f32; matmul operands stay bf16 (MXU-native).
            h = jnp.maximum(z, 0.0).astype(jnp.bfloat16)
        else:
            out_ref[...] = z.astype(out_ref.dtype)


def kiwi_forward(x, core_params, out_w, out_b, kids_nb, *,
                 tile_b=32 * 1024, out_dtype=jnp.bfloat16, eps=1e-5):
    """Eval-mode forward of Kiwi.

    x: any shape with total size divisible by in_shape (= kids_nb*2+3).
    core_params: list of (w[out,in], b[out], gamma, beta, run_mean, run_var).
    out_w: [kids_nb, last_hidden], out_b: [kids_nb].
    Returns f32 [batch, kids_nb].
    """
    in_shape = kids_nb * 2 + 3
    x2d = x.reshape(-1, in_shape).astype(jnp.float32)
    batch = x2d.shape[0]

    # ---- Fold eval-mode BatchNorm of block i into Linear i+1 (or out layer) ----
    ws, bs = [], []
    prev_scale = prev_shift = None
    for (w, b, gamma, beta, mean, var) in core_params:
        w = w.astype(jnp.float32)
        b = b.astype(jnp.float32)
        if prev_scale is not None:
            b = b + w @ prev_shift            # uses the un-scaled W
            w = w * prev_scale[None, :]
        scale = gamma / jnp.sqrt(var + eps)
        shift = beta - mean * scale
        ws.append(w)
        bs.append(b)
        prev_scale, prev_shift = scale, shift
    ow = out_w.astype(jnp.float32)
    ob = out_b.astype(jnp.float32)
    if prev_scale is not None:
        ob = ob + ow @ prev_shift
        ow = ow * prev_scale[None, :]
    ws.append(ow)
    bs.append(ob)

    # ---- Pad bf16 feature dims to multiples of 16 (packed sublane tiles) ----
    dims = [in_shape] + [w.shape[0] for w in ws]          # e.g. [11, 32, 16, 4]
    dims_pad = [_round_up(d, 16) for d in dims]           # e.g. [16, 32, 16, 16]
    in_pad, kids_pad = dims_pad[0], dims_pad[-1]

    # ---- Batch tiling: large tiles, >=2 steps for big batches (v7x megacore),
    #      tile_b ~ pad_b/k so padding waste stays bounded. ----
    pad_b = _round_up(max(batch, 1), 128)
    target = max(128, _round_up(min(tile_b, pad_b), 128))
    n_steps = -(-pad_b // target)                          # cdiv
    if n_steps == 1 and pad_b >= 2048:
        n_steps = 2                                        # let both v7x TCs work
    tile_b = _round_up(-(-pad_b // n_steps), 128)
    pad_b = n_steps * tile_b

    # ---- Single fused pad + cast(bf16) + transpose pass; feature-major input ----
    xT = jnp.pad(x2d.astype(jnp.bfloat16).T,
                 ((0, in_pad - in_shape), (0, pad_b - batch)))

    flat = []
    for i, (w, b) in enumerate(zip(ws, bs)):
        op, ip = dims_pad[i + 1], dims_pad[i]
        wp = jnp.pad(w, ((0, op - w.shape[0]), (0, ip - w.shape[1]))
                     ).astype(jnp.bfloat16)
        bp = jnp.pad(b, (0, op - b.shape[0])).reshape(op, 1).astype(jnp.float32)
        flat += [wp, bp]

    n_layers = len(ws)
    grid = (n_steps,)

    # x / out tiled along batch (lanes); params full-block, VMEM-resident.
    in_specs = [pl.BlockSpec((in_pad, tile_b), lambda i: (0, i))]
    for p in flat:
        in_specs.append(pl.BlockSpec(p.shape, lambda i: (0, 0)))
    out_specs = pl.BlockSpec((kids_pad, tile_b), lambda i: (0, i))

    # ---- Explicit VMEM budget: double-buffered I/O + per-layer intermediates ----
    out_isize = jnp.dtype(out_dtype).itemsize
    per_col = (2 * 2 * in_pad                       # bf16 input, double-buffered
               + 2 * out_isize * kids_pad           # output, double-buffered
               + sum(6 * d for d in dims_pad[1:]))  # f32 z + bf16 h per layer
    param_bytes = sum(int(p.size) * p.dtype.itemsize for p in flat)
    vmem_limit = int(min(56 * 2**20,
                         max(32 * 2**20, 2 * (per_col * tile_b + param_bytes))))

    flops = 2 * pad_b * sum(dims_pad[i] * dims_pad[i + 1] for i in range(n_layers))
    bytes_accessed = int(xT.size) * 2 + pad_b * kids_pad * out_isize + param_bytes
    cost = pl.CostEstimate(flops=flops, transcendentals=0,
                           bytes_accessed=bytes_accessed)

    yT = pl.pallas_call(
        functools.partial(_kiwi_kernel, n_layers),
        out_shape=jax.ShapeDtypeStruct((kids_pad, pad_b), out_dtype),
        grid=grid,
        in_specs=in_specs,
        out_specs=out_specs,
        compiler_params=pltpu.CompilerParams(
            dimension_semantics=("parallel",),
            vmem_limit_bytes=vmem_limit),
        cost_estimate=cost,
    )(xT, *flat)

    return yT[:kids_nb, :batch].T.astype(jnp.float32)


def init_kiwi_params(key, kids_nb, param_list):
    """Deterministic synthetic parameters matching Kiwi.__init__ shapes
    (PyTorch layout: Linear weight is [out, in])."""
    in_shape = kids_nb * 2 + 3
    dims = [in_shape] + list(param_list)

    core_params = []
    for i in range(len(dims) - 1):
        n_in, n_out = dims[i], dims[i + 1]
        key, k_w, k_b, k_g, k_be, k_m, k_v = jax.random.split(key, 7)
        w = jax.random.normal(k_w, (n_out, n_in), jnp.float32) * 0.1
        b = jax.random.normal(k_b, (n_out,), jnp.float32) * 0.1
        gamma = 1.0 + 0.1 * jax.random.normal(k_g, (n_out,), jnp.float32)
        beta = 0.1 * jax.random.normal(k_be, (n_out,), jnp.float32)
        run_mean = 0.1 * jax.random.normal(k_m, (n_out,), jnp.float32)
        run_var = 1.0 + 0.1 * jax.random.uniform(k_v, (n_out,), jnp.float32)
        core_params.append((w, b, gamma, beta, run_mean, run_var))

    n_last = dims[-1]
    key, k_w, k_b = jax.random.split(key, 3)
    out_w = jax.random.normal(k_w, (kids_nb, n_last), jnp.float32) * 0.1
    out_b = jax.random.normal(k_b, (kids_nb,), jnp.float32) * 0.1
    return core_params, out_w, out_b


def kiwi_reference(x, core_params, out_w, out_b, kids_nb, eps=1e-5):
    """Pure-JAX reference of the same eval-mode forward (no folding)."""
    in_shape = kids_nb * 2 + 3
    h = x.reshape(-1, in_shape).astype(jnp.float32)
    for (w, b, gamma, beta, mean, var) in core_params:
        h = jnp.maximum(h @ w.T + b, 0.0)
        h = (h - mean) / jnp.sqrt(var + eps) * gamma + beta
        # Dropout(0.25) -> identity at eval
    return (h @ out_w.T + out_b).reshape(-1, kids_nb)


if __name__ == "__main__":
    kids_nb = 4                      # -> in_shape = 11
    param_list = [32, 16]            # two core blocks

    key = jax.random.PRNGKey(0)
    key, k_p = jax.random.split(key)
    core_params, out_w, out_b = init_kiwi_params(k_p, kids_nb, param_list)

    # 1) Small demo batch (single grid step, default large-tile config).
    key, k_x = jax.random.split(key)
    x = jax.random.normal(k_x, (8, kids_nb * 2 + 3), jnp.float32)
    y = jax.block_until_ready(kiwi_forward(x, core_params, out_w, out_b, kids_nb))
    y_ref = kiwi_reference(x, core_params, out_w, out_b, kids_nb)
    assert y.shape == (8, kids_nb)
    # bf16 matmul operands / bf16 kernel output -> loosened tolerance vs f32 ref.
    assert jnp.allclose(y, y_ref, atol=3e-2, rtol=3e-2), "mismatch vs reference"

    # 2) Multi-step grid (exercises batch tiling + padding / masked columns).
    key, k_x2 = jax.random.split(key)
    x2 = jax.random.normal(k_x2, (300, kids_nb * 2 + 3), jnp.float32)
    y2 = jax.block_until_ready(
        kiwi_forward(x2, core_params, out_w, out_b, kids_nb, tile_b=128))
    y2_ref = kiwi_reference(x2, core_params, out_w, out_b, kids_nb)
    assert y2.shape == (300, kids_nb)
    assert jnp.allclose(y2, y2_ref, atol=3e-2, rtol=3e-2), "mismatch vs reference"

    print("KERNEL_OK")
</pallas_src>

<mosaic_0001>
module attributes {stable_mosaic.version = 11 : i64} {
  func.func @_kiwi_kernel(%arg0: i32, %arg1: memref<16x128xbf16, #tpu.memory_space<vmem>>, %arg2: memref<32x16xbf16, #tpu.memory_space<vmem>>, %arg3: memref<32x1xf32, #tpu.memory_space<vmem>>, %arg4: memref<16x32xbf16, #tpu.memory_space<vmem>>, %arg5: memref<16x1xf32, #tpu.memory_space<vmem>>, %arg6: memref<16x16xbf16, #tpu.memory_space<vmem>>, %arg7: memref<16x1xf32, #tpu.memory_space<vmem>>, %arg8: memref<16x128xbf16, #tpu.memory_space<vmem>>) attributes {dimension_semantics = [#tpu.dimension_semantics<parallel>], iteration_bounds = array<i64: 1>, scalar_prefetch = 0 : i64, scratch_operands = 0 : i64, tpu.core_type = #tpu.core_type<tc>, window_params = [{transform_indices = @transform_0, window_bounds = array<i64: 16, 128>}, {pipeline_mode = #tpu.pipeline_mode<synchronous>, transform_indices = @transform_1, window_bounds = array<i64: 32, 16>}, {pipeline_mode = #tpu.pipeline_mode<synchronous>, transform_indices = @transform_2, window_bounds = array<i64: 32, 1>}, {pipeline_mode = #tpu.pipeline_mode<synchronous>, transform_indices = @transform_3, window_bounds = array<i64: 16, 32>}, {pipeline_mode = #tpu.pipeline_mode<synchronous>, transform_indices = @transform_4, window_bounds = array<i64: 16, 1>}, {pipeline_mode = #tpu.pipeline_mode<synchronous>, transform_indices = @transform_5, window_bounds = array<i64: 16, 16>}, {pipeline_mode = #tpu.pipeline_mode<synchronous>, transform_indices = @transform_6, window_bounds = array<i64: 16, 1>}, {transform_indices = @transform_7, window_bounds = array<i64: 16, 128>}]} {
    %c0 = arith.constant 0 : index
    %c0_0 = arith.constant 0 : index
    %0 = vector.load %arg1[%c0, %c0_0] : memref<16x128xbf16, #tpu.memory_space<vmem>>, vector<16x128xbf16>
    %c0_1 = arith.constant 0 : index
    %c0_2 = arith.constant 0 : index
    %1 = vector.load %arg2[%c0_1, %c0_2] : memref<32x16xbf16, #tpu.memory_space<vmem>>, vector<32x16xbf16>
    %c0_3 = arith.constant 0 : index
    %c0_4 = arith.constant 0 : index
    %2 = vector.load %arg3[%c0_3, %c0_4] : memref<32x1xf32, #tpu.memory_space<vmem>>, vector<32x1xf32>
    %cst = arith.constant dense<0.000000e+00> : vector<32x128xf32>
    %3 = tpu.matmul %1, %0, %cst {dimension_numbers = #tpu.dot_dimension_numbers<[1], [0], [0], [1], [0, 0, 1, 1], [], []>} : vector<32x16xbf16>, vector<16x128xbf16>, vector<32x128xf32> -> vector<32x128xf32>
    %4 = vector.broadcast %2 : vector<32x1xf32> to vector<32x128xf32>
    %5 = arith.addf %3, %4 : vector<32x128xf32>
    %cst_5 = arith.constant 0.000000e+00 : f32
    %6 = vector.broadcast %cst_5 : f32 to vector<32x128xf32>
    %7 = arith.maximumf %5, %6 : vector<32x128xf32>
    %8 = arith.truncf %7 : vector<32x128xf32> to vector<32x128xbf16>
    %c0_6 = arith.constant 0 : index
    %c0_7 = arith.constant 0 : index
    %9 = vector.load %arg4[%c0_6, %c0_7] : memref<16x32xbf16, #tpu.memory_space<vmem>>, vector<16x32xbf16>
    %c0_8 = arith.constant 0 : index
    %c0_9 = arith.constant 0 : index
    %10 = vector.load %arg5[%c0_8, %c0_9] : memref<16x1xf32, #tpu.memory_space<vmem>>, vector<16x1xf32>
    %cst_10 = arith.constant dense<0.000000e+00> : vector<16x128xf32>
    %11 = tpu.matmul %9, %8, %cst_10 {dimension_numbers = #tpu.dot_dimension_numbers<[1], [0], [0], [1], [0, 0, 1, 1], [], []>} : vector<16x32xbf16>, vector<32x128xbf16>, vector<16x128xf32> -> vector<16x128xf32>
    %12 = vector.broadcast %10 : vector<16x1xf32> to vector<16x128xf32>
    %13 = arith.addf %11, %12 : vector<16x128xf32>
    %cst_11 = arith.constant 0.000000e+00 : f32
    %14 = vector.broadcast %cst_11 : f32 to vector<16x128xf32>
    %15 = arith.maximumf %13, %14 : vector<16x128xf32>
    %16 = arith.truncf %15 : vector<16x128xf32> to vector<16x128xbf16>
    %c0_12 = arith.constant 0 : index
    %c0_13 = arith.constant 0 : index
    %17 = vector.load %arg6[%c0_12, %c0_13] : memref<16x16xbf16, #tpu.memory_space<vmem>>, vector<16x16xbf16>
    %c0_14 = arith.constant 0 : index
    %c0_15 = arith.constant 0 : index
    %18 = vector.load %arg7[%c0_14, %c0_15] : memref<16x1xf32, #tpu.memory_space<vmem>>, vector<16x1xf32>
    %cst_16 = arith.constant dense<0.000000e+00> : vector<16x128xf32>
    %19 = tpu.matmul %17, %16, %cst_16 {dimension_numbers = #tpu.dot_dimension_numbers<[1], [0], [0], [1], [0, 0, 1, 1], [], []>} : vector<16x16xbf16>, vector<16x128xbf16>, vector<16x128xf32> -> vector<16x128xf32>
    %20 = vector.broadcast %18 : vector<16x1xf32> to vector<16x128xf32>
    %21 = arith.addf %19, %20 : vector<16x128xf32>
    %22 = arith.truncf %21 : vector<16x128xf32> to vector<16x128xbf16>
    %c0_17 = arith.constant 0 : index
    %c0_18 = arith.constant 0 : index
    %23 = vector.load %arg8[%c0_17, %c0_18] : memref<16x128xbf16, #tpu.memory_space<vmem>>, vector<16x128xbf16>
    tpu.vector_store %arg8[%c0_17, %c0_18], %22 {strides = array<i32>} : memref<16x128xbf16, #tpu.memory_space<vmem>>, vector<16x128xbf16>,
    return
  }
  func.func @transform_0(%arg0: i32) -> (i32, i32) {
    %c0_i32 = arith.constant 0 : i32
    %c0_i32_0 = arith.constant 0 : i32
    return %c0_i32, %arg0 : i32, i32
  }
  func.func @transform_1(%arg0: i32) -> (i32, i32) {
    %c0_i32 = arith.constant 0 : i32
    %c0_i32_0 = arith.constant 0 : i32
    %c0_i32_1 = arith.constant 0 : i32
    return %c0_i32, %c0_i32_0 : i32, i32
  }
  func.func @transform_2(%arg0: i32) -> (i32, i32) {
    %c0_i32 = arith.constant 0 : i32
    %c0_i32_0 = arith.constant 0 : i32
    %c0_i32_1 = arith.constant 0 : i32
    return %c0_i32, %c0_i32_0 : i32, i32
  }
  func.func @transform_3(%arg0: i32) -> (i32, i32) {
    %c0_i32 = arith.constant 0 : i32
    %c0_i32_0 = arith.constant 0 : i32
    %c0_i32_1 = arith.constant 0 : i32
    return %c0_i32, %c0_i32_0 : i32, i32
  }
  func.func @transform_4(%arg0: i32) -> (i32, i32) {
    %c0_i32 = arith.constant 0 : i32
    %c0_i32_0 = arith.constant 0 : i32
    %c0_i32_1 = arith.constant 0 : i32
    return %c0_i32, %c0_i32_0 : i32, i32
  }
  func.func @transform_5(%arg0: i32) -> (i32, i32) {
    %c0_i32 = arith.constant 0 : i32
    %c0_i32_0 = arith.constant 0 : i32
    %c0_i32_1 = arith.constant 0 : i32
    return %c0_i32, %c0_i32_0 : i32, i32
  }
  func.func @transform_6(%arg0: i32) -> (i32, i32) {
    %c0_i32 = arith.constant 0 : i32
    %c0_i32_0 = arith.constant 0 : i32
    %c0_i32_1 = arith.constant 0 : i32
    return %c0_i32, %c0_i32_0 : i32, i32
  }
  func.func @transform_7(%arg0: i32) -> (i32, i32) {
    %c0_i32 = arith.constant 0 : i32
    %c0_i32_0 = arith.constant 0 : i32
    return %c0_i32, %arg0 : i32, i32
  }
}

</mosaic_0001>

<bundles_post_ra>
// kernel: tpu_custom_call.1
= control target key start
LH: loop header
LB: loop body
LE: loop exit
PB: predicated region body
PF: predicated region fallthrough
CT: control target
= control target key end

     0   :  { %v272_v2 = vmov 0   ;;  %vm74_vm0 = vcmask 130048   ;;  %s361_s0 = inlined_call_operand.vmem [shape: bf16[16,128], index: 0, kind: input, shape index: {}]   ;;  %s362_s1 = inlined_call_operand.vmem [shape: bf16[32,16], index: 1, kind: input, shape index: {}]   ;;  %s363_s2 = inlined_call_operand.vmem [shape: f32[32,1], index: 2, kind: input, shape index: {}]   ;;  %s364_s3 = inlined_call_operand.vmem [shape: bf16[16,32], index: 3, kind: input, shape index: {}]   ;;  %s365_s4 = inlined_call_operand.vmem [shape: f32[16,1], index: 4, kind: input, shape index: {}]   ;;  %s366_s5 = inlined_call_operand.vmem [shape: bf16[16,16], index: 5, kind: input, shape index: {}]   ;;  %s367_s6 = inlined_call_operand.vmem [shape: f32[16,1], index: 6, kind: input, shape index: {}]   ;;  %s368_s7 = inlined_call_operand.hbm [shape: bf16[16,128], index: 7, kind: output, shape index: {}]  }
   0x1   :  { %v228_v0 = vld [vmem:[%s361_s0] sm:$0xff]  ;;  %v36_v1 = vld [vmem:[%s363_s2 + $0x10] sm:$0xff]  ;;  %243 = vset.pattern.permute.xlu0 %v272_v2  ;;  %v230_v3 = vld [vmem:[%s362_s1 + $0x8] sm:$0xff]  ;;  %244 = vset.pattern.permute.xlu1 %v272_v2 }
   0x2   :  { %v229_v4 = vld [vmem:[%s362_s1] sm:$0xff]  ;;  %238 = vmatpush.bf16.msra.mxu3 %v228_v0  ;;  %88 = vmatpush.bf16.msra.mxu0 %v228_v0 }
   0x3   :  { %v34_v5 = vld [vmem:[%s363_s2] sm:$0xff]  ;;  %50 = vperm.xlu0 %243, %v36_v1  }
   0x4   :  { %40 = vperm.xlu1 %244, %v34_v5  }
   0x5   :  { %12 = vsyncpa [#allocation3], 0  ;;  %245 = vset.pattern.permute.xlu2 %v272_v2  ;;  %217 = vmatmul.msk.bf16.vlgmr.msra.gmra.mxu3 %vm74_vm0, %v230_v3  ;;  %v37_v6 = vld [vmem:[%s363_s2 + $0x18] sm:$0xff]  ;;  %v35_v7 = vld [vmem:[%s363_s2 + $0x8] sm:$0xff]  ;;  %vm125_vm1 = vcmask 261120   ;;  %s192_s25 = sshll.u32 %s368_s7, 4  ;;  %s193_s25 = int_to_ptr.hbm [resolvable:$true] %s192_s25 }
   0x6   :  { %216 = vmatmul.msk.bf16.vlgmr.msra.gmra.mxu0 %vm74_vm0, %v229_v4  ;;  %v148_v8 = vld [vmem:[%s367_s6] sm:$0xff]  ;;  %v149_v9 = vld [vmem:[%s367_s6 + $0x8] sm:$0xff]  ;;  %s275_s26 = smov 4  }
   0x7   :  { %v108_v10 = vld [vmem:[%s365_s4] sm:$0xff]  ;;  %v109_v12 = vld [vmem:[%s365_s4 + $0x8] sm:$0xff] }
   0x8   :  { %112 = vperm.xlu2 %245, %v108_v10   ;;  %v231_v30 = vld [vmem:[%s364_s3] sm:$0xff]  ;;  %s273_s3 = smov [#allocation2]  }
   0x9   :  { %v232_v40 = vld [vmem:[%s366_s5] sm:$0xff]  ;;  %s190_s22 = sshll.u32 %s273_s3, 4  ;;  %s274_s5 = smov 64   ;;  %s191_s22 = int_to_ptr.vmem [resolvable:$true] %s190_s22 }
   0xb   :  { %55 = vperm.xlu0 %243, %v37_v6  }
   0xc   :  { %45 = vperm.xlu1 %244, %v35_v7  }
  0x10   :  { %117 = vperm.xlu2 %245, %v109_v12  }
  0x13   :  { %152 = vperm.xlu0 %243, %v148_v8  }
  0x14   :  { %157 = vperm.xlu1 %244, %v149_v9  }
  0x62   :  { %v113_v31 = vpop.permute.xlu2 %112 }
  0x6a   :  { %v118_v34 = vpop.permute.xlu2 %117 }
  0x75   :  { %v51_v13 = vpop.permute.xlu0 %50 }
  0x76   :  { %v41_v14 = vpop.permute.xlu1 %40 }
  0x7d   :  { %v56_v17 = vpop.permute.xlu0 %55 }
  0x7e   :  { %v46_v19 = vpop.permute.xlu1 %45 }
  0x83   :  { %v90_v11 = vpop.f32.mrf.mxu0 }
  0x84   :  { %v91_v21 = vadd.f32 %v90_v11, %v41_v14 }
  0x85   :  { %v153_v42 = vpop.permute.xlu0 %152 }
  0x86   :  { %v100_v26 = vmax.f32 %v91_v21, 0.0  ;;  %v158_v43 = vpop.permute.xlu1 %157 }
  0x88   :  { %v95_v15 = vpop.f32.mrf.mxu3 }
  0x89   :  { %v96_v18 = vadd.f32 %v95_v15, %v51_v13 }
  0x8b   :  { %v92_v16 = vpop.f32.mrf.mxu0  ;;  %v102_v24 = vmax.f32 %v96_v18, 0.0 }
  0x8c   :  { %v93_v22 = vadd.f32 %v92_v16, %v46_v19 }
  0x8e   :  { %v101_v27 = vmax.f32 %v93_v22, 0.0 }
  0x90   :  { %v97_v20 = vpop.f32.mrf.mxu3  ;;  %v104_v29 = vpack.c.bf16 %v101_v27, %v100_v26 }
  0x91   :  { %v98_v23 = vadd.f32 %v97_v20, %v56_v17 }
  0x93   :  { %v103_v25 = vmax.f32 %v98_v23, 0.0 }
  0x95   :  { %v105_v28 = vpack.c.bf16 %v103_v25, %v102_v24 }
  0x97   :  { %135 = vmatpush.bf16.msra.mxu1 %v105_v28 }
  0x9b   :  { %136 = vmatpush.bf16.msra.mxu1 %v104_v29 }
  0x9e   :  { %222 = vmatmul.msk.bf16.vlgmr.msra.gmra.mxu1 %vm125_vm1, %v231_v30 }
 0x11b   :  { %v138_v32 = vpop.f32.mrf.mxu1 }
 0x11c   :  { %v139_v33 = vadd.f32 %v138_v32, %v113_v31 }
 0x11e   :  { %v143_v37 = vmax.f32 %v139_v33, 0.0 }
 0x123   :  { %v140_v35 = vpop.f32.mrf.mxu1 }
 0x124   :  { %v141_v36 = vadd.f32 %v140_v35, %v118_v34 }
 0x126   :  { %v144_v38 = vmax.f32 %v141_v36, 0.0 }
 0x128   :  { %v145_v39 = vpack.c.bf16 %v144_v38, %v143_v37 }
 0x12a   :  { %175 = vmatpush.bf16.msra.mxu2 %v145_v39 }
 0x12d   :  { %227 = vmatmul.msk.bf16.vlgmr.msra.gmra.mxu2 %vm74_vm0, %v232_v40 }
 0x1b0   :  { %v177_v41 = vpop.f32.mrf.mxu2 }
 0x1b1   :  { %v178_v45 = vadd.f32 %v177_v41, %v153_v42 }
 0x1b8   :  { %v179_v44 = vpop.f32.mrf.mxu2 }
 0x1b9   :  { %v180_v46 = vadd.f32 %v179_v44, %v158_v43 }
 0x1bb   :  { %v236_v47 = vpack.c.bf16 %v180_v46, %v178_v45 }
 0x1bd   :  { %237 = vst [vmem:[#allocation2] sm:$0xff] %v236_v47  }
 0x1be   :  { %198 = dma.vmem_to_hbm [thread:$0]  %s191_s22, 128, %s193_s25, [#allocation3], %s274_s5, %s274_s5, %s275_s26  }
 0x1bf   :  { %270 = dma.done.wait [#allocation3], 128  }
 0x1c0   :  { %271 = vsyncadd [#allocation3], 4294967168 }
 0x1c1   :  { %203 = vsyncpa [#allocation3], 1 }

</bundles_post_ra>
